<compile_context>
chip_gen: v5e
topology: v5e:2x2
jax: 0.10.0
libtpu: 0.0.40
codegen_flags: <defaults>
</compile_context>

<pallas_src>
import functools

import jax
import jax.numpy as jnp
import numpy as np
from jax.experimental import pallas as pl
from jax.experimental.pallas import tpu as pltpu


def _fuse_kernel(x_s_ref, x_f_ref, w_ref, o_ref, *, k, alpha, pad,
                 t_out, c_in, t_f):
    """One (batch, lane-tile) block.

    x_s_ref: (C_s*T_s, L)        slow pathway rows (row = c*T_s + t), copied
    x_f_ref: (C_in*T_f, L)       fast pathway rows (row = ci*T_f + t)
    w_ref:   (C_out, k*C_in+1)   BN-folded conv weights; last column = bias
    o_ref:   ((C_s+C_out)*T_out, L)  concatenated output rows
    """
    s_rows, l = x_s_ref.shape
    c_out = w_ref.shape[0]

    # torch.cat([x_s, fuse], 1): slow channels pass straight through.
    # One dense (C_s*T_s, L) copy -> full-sublane / full-lane stores.
    o_ref[pl.ds(0, s_rows), :] = x_s_ref[...]

    # Hoist t-invariant weight extraction out of the loops (single load).
    w = w_ref[...]                                        # (C_out, k*C_in+1)
    w_cols = [w[:, c:c + 1] for c in range(k * c_in)]     # each (C_out, 1)
    bias = w[:, k * c_in:k * c_in + 1].reshape(c_out, 1, 1)

    # Temporal conv via VPU broadcast FMAs (channels are tiny in this config).
    rows = []
    for t in range(t_out):                                # static, tiny
        acc = jnp.zeros((c_out, l), jnp.float32)
        for dt in range(k):                               # temporal taps
            tin = t * alpha - pad + dt
            if tin < 0 or tin >= t_f:                     # implicit zero pad
                continue
            for ci in range(c_in):                        # input channels
                x_row = x_f_ref[pl.ds(ci * t_f + tin, 1), :]        # (1, L)
                acc = acc + w_cols[dt * c_in + ci] * x_row          # (C_out, L)
        rows.append(acc)

    # Coalesce: BN bias + ReLU on the whole slab, then ONE dense store of
    # (C_out*T_out, L) rows (row = co*T_out + t) instead of per-t masked vst.
    fuse = jnp.stack(rows, axis=1) + bias                 # (C_out, T_out, L)
    fuse = jnp.maximum(fuse, 0.0).reshape(c_out * t_out, l)
    o_ref[pl.ds(s_rows, c_out * t_out), :] = fuse.astype(o_ref.dtype)


def _pick_lane_tile(hw, total_rows, *, budget_bytes=40 << 20, max_l=1024):
    """Lane tile: a multiple of 128, bounded by a double-buffered VMEM budget.

    max_l=1024 keeps the staged (C_out*T_out, L) f32 result comfortably inside
    the 64-vreg file; the budget keeps the pipelined footprint under v7x's
    64 MiB physical VMEM even for real SlowFast channel counts.
    """
    per_lane = 2 * 4 * total_rows            # double-buffered f32 bytes / lane
    l = (budget_bytes // per_lane) // 128 * 128
    l = max(128, min(max_l, l))
    l = min(l, max(128, -(-hw // 128) * 128))  # no point exceeding padded HW
    if hw % 128 == 0:
        while l > 128 and hw % l != 0:       # prefer exact tiling (no ragged tile)
            l -= 128
    return l


def fuse_fast_to_slow(x_s, x_f, params, *, alpha):
    """x_s: (N, C_s, T_s, H, W); x_f: (N, C_in, T_f, H, W)  (PyTorch NCTHW)."""
    N, C_in, T_f, H, W = x_f.shape
    _, C_s, T_s, _, _ = x_s.shape
    w = params["conv_w"]                          # (C_out, C_in, k, 1, 1)
    C_out, k = w.shape[0], w.shape[2]
    pad = k // 2
    T_out = (T_f + 2 * pad - k) // alpha + 1
    if T_out != T_s:
        raise ValueError(
            f"fused temporal length {T_out} != slow temporal length {T_s}; "
            "alpha / fusion_kernel inconsistent (torch.cat would fail here too)")

    # Fold BatchNorm3d (inference) into the conv weight (scale) + a bias, and
    # pack the bias as one extra weight column so a single tiny constant block
    # is DMA'd (it pads to one (8,128) VMEM tile anyway).
    inv_std = jax.lax.rsqrt(params["bn_var"].astype(jnp.float32) +
                            jnp.float32(params["bn_eps"]))
    scale = params["bn_gamma"].astype(jnp.float32) * inv_std           # (C_out,)
    bias = (params["bn_beta"].astype(jnp.float32) -
            params["bn_mean"].astype(jnp.float32) * scale)             # (C_out,)
    w_scaled = w[:, :, :, 0, 0].astype(jnp.float32) * scale[:, None, None]
    # (C_out, C_in, k) -> (C_out, k, C_in) -> (C_out, k*C_in), col = dt*C_in+ci
    w_flat = jnp.transpose(w_scaled, (0, 2, 1)).reshape(C_out, k * C_in)
    w_aug = jnp.concatenate([w_flat, bias[:, None]], axis=1)  # (C_out, k*C_in+1)

    # Free reshapes (NCTHW memory order): C*T rows on the sublane axis,
    # merged H*W on the lane axis.
    HW = H * W
    x_s_r = x_s.reshape(N, C_s * T_s, HW)
    x_f_r = x_f.reshape(N, C_in * T_f, HW)
    out_rows = (C_s + C_out) * T_out
    total_rows = C_s * T_s + C_in * T_f + out_rows

    L = _pick_lane_tile(HW, total_rows)
    n_hw = pl.cdiv(HW, L)                 # ragged last tile masked by Pallas
    footprint = 2 * 4 * total_rows * L + (1 << 20)
    vmem_limit = int(min(48 << 20, max(16 << 20, 2 * footprint)))

    kernel = functools.partial(_fuse_kernel, k=k, alpha=alpha, pad=pad,
                               t_out=T_out, c_in=C_in, t_f=T_f)
    fused = pl.pallas_call(
        kernel,
        out_shape=jax.ShapeDtypeStruct((N, out_rows, HW), x_s.dtype),
        grid=(N, n_hw),
        in_specs=[
            pl.BlockSpec((None, C_s * T_s, L), lambda n, j: (n, 0, j)),
            pl.BlockSpec((None, C_in * T_f, L), lambda n, j: (n, 0, j)),
            pl.BlockSpec((C_out, k * C_in + 1), lambda n, j: (0, 0)),
        ],
        out_specs=pl.BlockSpec((None, out_rows, L), lambda n, j: (n, 0, j)),
        compiler_params=pltpu.CompilerParams(
            dimension_semantics=("parallel", "parallel"),
            vmem_limit_bytes=vmem_limit),
    )(x_s_r, x_f_r, w_aug)

    x_s_fuse = fused.reshape(N, C_s + C_out, T_out, H, W)
    return [x_s_fuse, x_f]


if __name__ == "__main__":
    # Module config (small): dim_in=4, ratio=2, fusion_kernel=5, alpha=4
    dim_in, ratio, k, alpha = 4, 2, 5, 4
    N, H, W = 2, 16, 16          # HW = 256 (multiple of 128 -> lane-dense)
    T_s = 2
    T_f = T_s * alpha
    C_slow = 16
    C_out = dim_in * ratio
    eps = 1e-5

    key = jax.random.PRNGKey(0)
    k0, k1, k2, k3, k4, k5 = jax.random.split(key, 6)
    x_s = jax.random.normal(k0, (N, C_slow, T_s, H, W), jnp.float32)
    x_f = jax.random.normal(k1, (N, dim_in, T_f, H, W), jnp.float32)

    params = dict(
        conv_w=0.05 * jax.random.normal(k2, (C_out, dim_in, k, 1, 1), jnp.float32),
        bn_gamma=1.0 + 0.1 * jax.random.normal(k3, (C_out,), jnp.float32),
        bn_beta=0.1 * jax.random.normal(k4, (C_out,), jnp.float32),
        bn_mean=0.05 * jax.random.normal(k5, (C_out,), jnp.float32),
        bn_var=jnp.ones((C_out,), jnp.float32),
        bn_eps=eps,
    )

    out = fuse_fast_to_slow(x_s, x_f, params, alpha=alpha)
    jax.block_until_ready(out)
    x_s_fuse, x_f_out = out

    # ---- pure-JAX reference (conv3d + BN(eval) + relu + concat) ----
    pad = k // 2
    fuse_ref = jax.lax.conv_general_dilated(
        x_f, params["conv_w"],
        window_strides=(alpha, 1, 1),
        padding=((pad, pad), (0, 0), (0, 0)),
        dimension_numbers=("NCDHW", "OIDHW", "NCDHW"),
    )
    inv_std = 1.0 / jnp.sqrt(params["bn_var"] + eps)
    sc = (params["bn_gamma"] * inv_std).reshape(1, C_out, 1, 1, 1)
    bs = (params["bn_beta"] - params["bn_mean"] * params["bn_gamma"] * inv_std
          ).reshape(1, C_out, 1, 1, 1)
    fuse_ref = jnp.maximum(fuse_ref * sc + bs, 0.0)
    ref_fused = jnp.concatenate([x_s, fuse_ref], axis=1)

    assert x_s_fuse.shape == (N, C_slow + C_out, T_s, H, W)
    np.testing.assert_allclose(np.asarray(x_f_out), np.asarray(x_f),
                               rtol=0, atol=0)
    np.testing.assert_allclose(np.asarray(x_s_fuse), np.asarray(ref_fused),
                               rtol=5e-3, atol=5e-3)
    print("KERNEL_OK")
</pallas_src>

<mosaic_0001>
module attributes {stable_mosaic.version = 11 : i64} {
  func.func @_fuse_kernel(%arg0: i32, %arg1: i32, %arg2: memref<1x32x256xf32, #tpu.memory_space<vmem>>, %arg3: memref<1x32x256xf32, #tpu.memory_space<vmem>>, %arg4: memref<8x21xf32, #tpu.memory_space<vmem>>, %arg5: memref<1x48x256xf32, #tpu.memory_space<vmem>>) attributes {dimension_semantics = [#tpu.dimension_semantics<parallel>, #tpu.dimension_semantics<parallel>], iteration_bounds = array<i64: 2, 1>, scalar_prefetch = 0 : i64, scratch_operands = 0 : i64, tpu.core_type = #tpu.core_type<tc>, window_params = [{transform_indices = @transform_0, window_bounds = array<i64: 1, 32, 256>}, {transform_indices = @transform_1, window_bounds = array<i64: 1, 32, 256>}, {pipeline_mode = #tpu.pipeline_mode<synchronous>, transform_indices = @transform_2, window_bounds = array<i64: 8, 21>}, {transform_indices = @transform_3, window_bounds = array<i64: 1, 48, 256>}]} {
    %c0 = arith.constant 0 : index
    %c0_0 = arith.constant 0 : index
    %c0_1 = arith.constant 0 : index
    %0 = vector.load %arg2[%c0, %c0_0, %c0_1] : memref<1x32x256xf32, #tpu.memory_space<vmem>>, vector<1x32x256xf32>
    %1 = vector.shape_cast %0 : vector<1x32x256xf32> to vector<32x256xf32>
    %c0_2 = arith.constant 0 : index
    %c0_3 = arith.constant 0 : index
    %c0_4 = arith.constant 0 : index
    %2 = vector.load %arg5[%c0_2, %c0_3, %c0_4] : memref<1x48x256xf32, #tpu.memory_space<vmem>>, vector<1x32x256xf32>
    %3 = vector.shape_cast %2 : vector<1x32x256xf32> to vector<32x256xf32>
    %4 = vector.shape_cast %1 : vector<32x256xf32> to vector<1x32x256xf32>
    tpu.vector_store %arg5[%c0_2, %c0_3, %c0_4], %4 {strides = array<i32>} : memref<1x48x256xf32, #tpu.memory_space<vmem>>, vector<1x32x256xf32>,
    %c0_5 = arith.constant 0 : index
    %c0_6 = arith.constant 0 : index
    %5 = vector.load %arg4[%c0_5, %c0_6] : memref<8x21xf32, #tpu.memory_space<vmem>>, vector<8x21xf32>
    %6 = vector.extract_strided_slice %5 {offsets = [0, 0], sizes = [8, 1], strides = [1, 1]} : vector<8x21xf32> to vector<8x1xf32>
    %7 = vector.extract_strided_slice %5 {offsets = [0, 1], sizes = [8, 1], strides = [1, 1]} : vector<8x21xf32> to vector<8x1xf32>
    %8 = vector.extract_strided_slice %5 {offsets = [0, 2], sizes = [8, 1], strides = [1, 1]} : vector<8x21xf32> to vector<8x1xf32>
    %9 = vector.extract_strided_slice %5 {offsets = [0, 3], sizes = [8, 1], strides = [1, 1]} : vector<8x21xf32> to vector<8x1xf32>
    %10 = vector.extract_strided_slice %5 {offsets = [0, 4], sizes = [8, 1], strides = [1, 1]} : vector<8x21xf32> to vector<8x1xf32>
    %11 = vector.extract_strided_slice %5 {offsets = [0, 5], sizes = [8, 1], strides = [1, 1]} : vector<8x21xf32> to vector<8x1xf32>
    %12 = vector.extract_strided_slice %5 {offsets = [0, 6], sizes = [8, 1], strides = [1, 1]} : vector<8x21xf32> to vector<8x1xf32>
    %13 = vector.extract_strided_slice %5 {offsets = [0, 7], sizes = [8, 1], strides = [1, 1]} : vector<8x21xf32> to vector<8x1xf32>
    %14 = vector.extract_strided_slice %5 {offsets = [0, 8], sizes = [8, 1], strides = [1, 1]} : vector<8x21xf32> to vector<8x1xf32>
    %15 = vector.extract_strided_slice %5 {offsets = [0, 9], sizes = [8, 1], strides = [1, 1]} : vector<8x21xf32> to vector<8x1xf32>
    %16 = vector.extract_strided_slice %5 {offsets = [0, 10], sizes = [8, 1], strides = [1, 1]} : vector<8x21xf32> to vector<8x1xf32>
    %17 = vector.extract_strided_slice %5 {offsets = [0, 11], sizes = [8, 1], strides = [1, 1]} : vector<8x21xf32> to vector<8x1xf32>
    %18 = vector.extract_strided_slice %5 {offsets = [0, 12], sizes = [8, 1], strides = [1, 1]} : vector<8x21xf32> to vector<8x1xf32>
    %19 = vector.extract_strided_slice %5 {offsets = [0, 13], sizes = [8, 1], strides = [1, 1]} : vector<8x21xf32> to vector<8x1xf32>
    %20 = vector.extract_strided_slice %5 {offsets = [0, 14], sizes = [8, 1], strides = [1, 1]} : vector<8x21xf32> to vector<8x1xf32>
    %21 = vector.extract_strided_slice %5 {offsets = [0, 15], sizes = [8, 1], strides = [1, 1]} : vector<8x21xf32> to vector<8x1xf32>
    %22 = vector.extract_strided_slice %5 {offsets = [0, 16], sizes = [8, 1], strides = [1, 1]} : vector<8x21xf32> to vector<8x1xf32>
    %23 = vector.extract_strided_slice %5 {offsets = [0, 17], sizes = [8, 1], strides = [1, 1]} : vector<8x21xf32> to vector<8x1xf32>
    %24 = vector.extract_strided_slice %5 {offsets = [0, 18], sizes = [8, 1], strides = [1, 1]} : vector<8x21xf32> to vector<8x1xf32>
    %25 = vector.extract_strided_slice %5 {offsets = [0, 19], sizes = [8, 1], strides = [1, 1]} : vector<8x21xf32> to vector<8x1xf32>
    %26 = vector.extract_strided_slice %5 {offsets = [0, 20], sizes = [8, 1], strides = [1, 1]} : vector<8x21xf32> to vector<8x1xf32>
    %27 = vector.shape_cast %26 : vector<8x1xf32> to vector<8x1x1xf32>
    %cst = arith.constant 0.000000e+00 : f32
    %28 = vector.broadcast %cst : f32 to vector<8x256xf32>
    %c0_7 = arith.constant 0 : index
    %c0_8 = arith.constant 0 : index
    %c0_9 = arith.constant 0 : index
    %29 = vector.load %arg3[%c0_7, %c0_8, %c0_9] : memref<1x32x256xf32, #tpu.memory_space<vmem>>, vector<1x1x256xf32>
    %30 = vector.shape_cast %29 : vector<1x1x256xf32> to vector<1x256xf32>
    %31 = vector.broadcast %14 : vector<8x1xf32> to vector<8x256xf32>
    %32 = vector.broadcast %30 : vector<1x256xf32> to vector<8x256xf32>
    %33 = arith.mulf %31, %32 : vector<8x256xf32>
    %34 = arith.addf %28, %33 : vector<8x256xf32>
    %c0_10 = arith.constant 0 : index
    %c8 = arith.constant 8 : index
    %c0_11 = arith.constant 0 : index
    %35 = vector.load %arg3[%c0_10, %c8, %c0_11] : memref<1x32x256xf32, #tpu.memory_space<vmem>>, vector<1x1x256xf32>
    %36 = vector.shape_cast %35 : vector<1x1x256xf32> to vector<1x256xf32>
    %37 = vector.broadcast %15 : vector<8x1xf32> to vector<8x256xf32>
    %38 = vector.broadcast %36 : vector<1x256xf32> to vector<8x256xf32>
    %39 = arith.mulf %37, %38 : vector<8x256xf32>
    %40 = arith.addf %34, %39 : vector<8x256xf32>
    %c0_12 = arith.constant 0 : index
    %c16 = arith.constant 16 : index
    %c0_13 = arith.constant 0 : index
    %41 = vector.load %arg3[%c0_12, %c16, %c0_13] : memref<1x32x256xf32, #tpu.memory_space<vmem>>, vector<1x1x256xf32>
    %42 = vector.shape_cast %41 : vector<1x1x256xf32> to vector<1x256xf32>
    %43 = vector.broadcast %16 : vector<8x1xf32> to vector<8x256xf32>
    %44 = vector.broadcast %42 : vector<1x256xf32> to vector<8x256xf32>
    %45 = arith.mulf %43, %44 : vector<8x256xf32>
    %46 = arith.addf %40, %45 : vector<8x256xf32>
    %c0_14 = arith.constant 0 : index
    %c24 = arith.constant 24 : index
    %c0_15 = arith.constant 0 : index
    %47 = vector.load %arg3[%c0_14, %c24, %c0_15] : memref<1x32x256xf32, #tpu.memory_space<vmem>>, vector<1x1x256xf32>
    %48 = vector.shape_cast %47 : vector<1x1x256xf32> to vector<1x256xf32>
    %49 = vector.broadcast %17 : vector<8x1xf32> to vector<8x256xf32>
    %50 = vector.broadcast %48 : vector<1x256xf32> to vector<8x256xf32>
    %51 = arith.mulf %49, %50 : vector<8x256xf32>
    %52 = arith.addf %46, %51 : vector<8x256xf32>
    %c0_16 = arith.constant 0 : index
    %c1 = arith.constant 1 : index
    %c0_17 = arith.constant 0 : index
    %53 = vector.load %arg3[%c0_16, %c1, %c0_17] : memref<1x32x256xf32, #tpu.memory_space<vmem>>, vector<1x1x256xf32>
    %54 = vector.shape_cast %53 : vector<1x1x256xf32> to vector<1x256xf32>
    %55 = vector.broadcast %18 : vector<8x1xf32> to vector<8x256xf32>
    %56 = vector.broadcast %54 : vector<1x256xf32> to vector<8x256xf32>
    %57 = arith.mulf %55, %56 : vector<8x256xf32>
    %58 = arith.addf %52, %57 : vector<8x256xf32>
    %c0_18 = arith.constant 0 : index
    %c9 = arith.constant 9 : index
    %c0_19 = arith.constant 0 : index
    %59 = vector.load %arg3[%c0_18, %c9, %c0_19] : memref<1x32x256xf32, #tpu.memory_space<vmem>>, vector<1x1x256xf32>
    %60 = vector.shape_cast %59 : vector<1x1x256xf32> to vector<1x256xf32>
    %61 = vector.broadcast %19 : vector<8x1xf32> to vector<8x256xf32>
    %62 = vector.broadcast %60 : vector<1x256xf32> to vector<8x256xf32>
    %63 = arith.mulf %61, %62 : vector<8x256xf32>
    %64 = arith.addf %58, %63 : vector<8x256xf32>
    %c0_20 = arith.constant 0 : index
    %c17 = arith.constant 17 : index
    %c0_21 = arith.constant 0 : index
    %65 = vector.load %arg3[%c0_20, %c17, %c0_21] : memref<1x32x256xf32, #tpu.memory_space<vmem>>, vector<1x1x256xf32>
    %66 = vector.shape_cast %65 : vector<1x1x256xf32> to vector<1x256xf32>
    %67 = vector.broadcast %20 : vector<8x1xf32> to vector<8x256xf32>
    %68 = vector.broadcast %66 : vector<1x256xf32> to vector<8x256xf32>
    %69 = arith.mulf %67, %68 : vector<8x256xf32>
    %70 = arith.addf %64, %69 : vector<8x256xf32>
    %c0_22 = arith.constant 0 : index
    %c25 = arith.constant 25 : index
    %c0_23 = arith.constant 0 : index
    %71 = vector.load %arg3[%c0_22, %c25, %c0_23] : memref<1x32x256xf32, #tpu.memory_space<vmem>>, vector<1x1x256xf32>
    %72 = vector.shape_cast %71 : vector<1x1x256xf32> to vector<1x256xf32>
    %73 = vector.broadcast %21 : vector<8x1xf32> to vector<8x256xf32>
    %74 = vector.broadcast %72 : vector<1x256xf32> to vector<8x256xf32>
    %75 = arith.mulf %73, %74 : vector<8x256xf32>
    %76 = arith.addf %70, %75 : vector<8x256xf32>
    %c0_24 = arith.constant 0 : index
    %c2 = arith.constant 2 : index
    %c0_25 = arith.constant 0 : index
    %77 = vector.load %arg3[%c0_24, %c2, %c0_25] : memref<1x32x256xf32, #tpu.memory_space<vmem>>, vector<1x1x256xf32>
    %78 = vector.shape_cast %77 : vector<1x1x256xf32> to vector<1x256xf32>
    %79 = vector.broadcast %22 : vector<8x1xf32> to vector<8x256xf32>
    %80 = vector.broadcast %78 : vector<1x256xf32> to vector<8x256xf32>
    %81 = arith.mulf %79, %80 : vector<8x256xf32>
    %82 = arith.addf %76, %81 : vector<8x256xf32>
    %c0_26 = arith.constant 0 : index
    %c10 = arith.constant 10 : index
    %c0_27 = arith.constant 0 : index
    %83 = vector.load %arg3[%c0_26, %c10, %c0_27] : memref<1x32x256xf32, #tpu.memory_space<vmem>>, vector<1x1x256xf32>
    %84 = vector.shape_cast %83 : vector<1x1x256xf32> to vector<1x256xf32>
    %85 = vector.broadcast %23 : vector<8x1xf32> to vector<8x256xf32>
    %86 = vector.broadcast %84 : vector<1x256xf32> to vector<8x256xf32>
    %87 = arith.mulf %85, %86 : vector<8x256xf32>
    %88 = arith.addf %82, %87 : vector<8x256xf32>
    %c0_28 = arith.constant 0 : index
    %c18 = arith.constant 18 : index
    %c0_29 = arith.constant 0 : index
    %89 = vector.load %arg3[%c0_28, %c18, %c0_29] : memref<1x32x256xf32, #tpu.memory_space<vmem>>, vector<1x1x256xf32>
    %90 = vector.shape_cast %89 : vector<1x1x256xf32> to vector<1x256xf32>
    %91 = vector.broadcast %24 : vector<8x1xf32> to vector<8x256xf32>
    %92 = vector.broadcast %90 : vector<1x256xf32> to vector<8x256xf32>
    %93 = arith.mulf %91, %92 : vector<8x256xf32>
    %94 = arith.addf %88, %93 : vector<8x256xf32>
    %c0_30 = arith.constant 0 : index
    %c26 = arith.constant 26 : index
    %c0_31 = arith.constant 0 : index
    %95 = vector.load %arg3[%c0_30, %c26, %c0_31] : memref<1x32x256xf32, #tpu.memory_space<vmem>>, vector<1x1x256xf32>
    %96 = vector.shape_cast %95 : vector<1x1x256xf32> to vector<1x256xf32>
    %97 = vector.broadcast %25 : vector<8x1xf32> to vector<8x256xf32>
    %98 = vector.broadcast %96 : vector<1x256xf32> to vector<8x256xf32>
    %99 = arith.mulf %97, %98 : vector<8x256xf32>
    %100 = arith.addf %94, %99 : vector<8x256xf32>
    %cst_32 = arith.constant 0.000000e+00 : f32
    %101 = vector.broadcast %cst_32 : f32 to vector<8x256xf32>
    %c0_33 = arith.constant 0 : index
    %c2_34 = arith.constant 2 : index
    %c0_35 = arith.constant 0 : index
    %102 = vector.load %arg3[%c0_33, %c2_34, %c0_35] : memref<1x32x256xf32, #tpu.memory_space<vmem>>, vector<1x1x256xf32>
    %103 = vector.shape_cast %102 : vector<1x1x256xf32> to vector<1x256xf32>
    %104 = vector.broadcast %6 : vector<8x1xf32> to vector<8x256xf32>
    %105 = vector.broadcast %103 : vector<1x256xf32> to vector<8x256xf32>
    %106 = arith.mulf %104, %105 : vector<8x256xf32>
    %107 = arith.addf %101, %106 : vector<8x256xf32>
    %c0_36 = arith.constant 0 : index
    %c10_37 = arith.constant 10 : index
    %c0_38 = arith.constant 0 : index
    %108 = vector.load %arg3[%c0_36, %c10_37, %c0_38] : memref<1x32x256xf32, #tpu.memory_space<vmem>>, vector<1x1x256xf32>
    %109 = vector.shape_cast %108 : vector<1x1x256xf32> to vector<1x256xf32>
    %110 = vector.broadcast %7 : vector<8x1xf32> to vector<8x256xf32>
    %111 = vector.broadcast %109 : vector<1x256xf32> to vector<8x256xf32>
    %112 = arith.mulf %110, %111 : vector<8x256xf32>
    %113 = arith.addf %107, %112 : vector<8x256xf32>
    %c0_39 = arith.constant 0 : index
    %c18_40 = arith.constant 18 : index
    %c0_41 = arith.constant 0 : index
    %114 = vector.load %arg3[%c0_39, %c18_40, %c0_41] : memref<1x32x256xf32, #tpu.memory_space<vmem>>, vector<1x1x256xf32>
    %115 = vector.shape_cast %114 : vector<1x1x256xf32> to vector<1x256xf32>
    %116 = vector.broadcast %8 : vector<8x1xf32> to vector<8x256xf32>
    %117 = vector.broadcast %115 : vector<1x256xf32> to vector<8x256xf32>
    %118 = arith.mulf %116, %117 : vector<8x256xf32>
    %119 = arith.addf %113, %118 : vector<8x256xf32>
    %c0_42 = arith.constant 0 : index
    %c26_43 = arith.constant 26 : index
    %c0_44 = arith.constant 0 : index
    %120 = vector.load %arg3[%c0_42, %c26_43, %c0_44] : memref<1x32x256xf32, #tpu.memory_space<vmem>>, vector<1x1x256xf32>
    %121 = vector.shape_cast %120 : vector<1x1x256xf32> to vector<1x256xf32>
    %122 = vector.broadcast %9 : vector<8x1xf32> to vector<8x256xf32>
    %123 = vector.broadcast %121 : vector<1x256xf32> to vector<8x256xf32>
    %124 = arith.mulf %122, %123 : vector<8x256xf32>
    %125 = arith.addf %119, %124 : vector<8x256xf32>
    %c0_45 = arith.constant 0 : index
    %c3 = arith.constant 3 : index
    %c0_46 = arith.constant 0 : index
    %126 = vector.load %arg3[%c0_45, %c3, %c0_46] : memref<1x32x256xf32, #tpu.memory_space<vmem>>, vector<1x1x256xf32>
    %127 = vector.shape_cast %126 : vector<1x1x256xf32> to vector<1x256xf32>
    %128 = vector.broadcast %10 : vector<8x1xf32> to vector<8x256xf32>
    %129 = vector.broadcast %127 : vector<1x256xf32> to vector<8x256xf32>
    %130 = arith.mulf %128, %129 : vector<8x256xf32>
    %131 = arith.addf %125, %130 : vector<8x256xf32>
    %c0_47 = arith.constant 0 : index
    %c11 = arith.constant 11 : index
    %c0_48 = arith.constant 0 : index
    %132 = vector.load %arg3[%c0_47, %c11, %c0_48] : memref<1x32x256xf32, #tpu.memory_space<vmem>>, vector<1x1x256xf32>
    %133 = vector.shape_cast %132 : vector<1x1x256xf32> to vector<1x256xf32>
    %134 = vector.broadcast %11 : vector<8x1xf32> to vector<8x256xf32>
    %135 = vector.broadcast %133 : vector<1x256xf32> to vector<8x256xf32>
    %136 = arith.mulf %134, %135 : vector<8x256xf32>
    %137 = arith.addf %131, %136 : vector<8x256xf32>
    %c0_49 = arith.constant 0 : index
    %c19 = arith.constant 19 : index
    %c0_50 = arith.constant 0 : index
    %138 = vector.load %arg3[%c0_49, %c19, %c0_50] : memref<1x32x256xf32, #tpu.memory_space<vmem>>, vector<1x1x256xf32>
    %139 = vector.shape_cast %138 : vector<1x1x256xf32> to vector<1x256xf32>
    %140 = vector.broadcast %12 : vector<8x1xf32> to vector<8x256xf32>
    %141 = vector.broadcast %139 : vector<1x256xf32> to vector<8x256xf32>
    %142 = arith.mulf %140, %141 : vector<8x256xf32>
    %143 = arith.addf %137, %142 : vector<8x256xf32>
    %c0_51 = arith.constant 0 : index
    %c27 = arith.constant 27 : index
    %c0_52 = arith.constant 0 : index
    %144 = vector.load %arg3[%c0_51, %c27, %c0_52] : memref<1x32x256xf32, #tpu.memory_space<vmem>>, vector<1x1x256xf32>
    %145 = vector.shape_cast %144 : vector<1x1x256xf32> to vector<1x256xf32>
    %146 = vector.broadcast %13 : vector<8x1xf32> to vector<8x256xf32>
    %147 = vector.broadcast %145 : vector<1x256xf32> to vector<8x256xf32>
    %148 = arith.mulf %146, %147 : vector<8x256xf32>
    %149 = arith.addf %143, %148 : vector<8x256xf32>
    %c0_53 = arith.constant 0 : index
    %c4 = arith.constant 4 : index
    %c0_54 = arith.constant 0 : index
    %150 = vector.load %arg3[%c0_53, %c4, %c0_54] : memref<1x32x256xf32, #tpu.memory_space<vmem>>, vector<1x1x256xf32>
    %151 = vector.shape_cast %150 : vector<1x1x256xf32> to vector<1x256xf32>
    %152 = vector.broadcast %14 : vector<8x1xf32> to vector<8x256xf32>
    %153 = vector.broadcast %151 : vector<1x256xf32> to vector<8x256xf32>
    %154 = arith.mulf %152, %153 : vector<8x256xf32>
    %155 = arith.addf %149, %154 : vector<8x256xf32>
    %c0_55 = arith.constant 0 : index
    %c12 = arith.constant 12 : index
    %c0_56 = arith.constant 0 : index
    %156 = vector.load %arg3[%c0_55, %c12, %c0_56] : memref<1x32x256xf32, #tpu.memory_space<vmem>>, vector<1x1x256xf32>
    %157 = vector.shape_cast %156 : vector<1x1x256xf32> to vector<1x256xf32>
    %158 = vector.broadcast %15 : vector<8x1xf32> to vector<8x256xf32>
    %159 = vector.broadcast %157 : vector<1x256xf32> to vector<8x256xf32>
    %160 = arith.mulf %158, %159 : vector<8x256xf32>
    %161 = arith.addf %155, %160 : vector<8x256xf32>
    %c0_57 = arith.constant 0 : index
    %c20 = arith.constant 20 : index
    %c0_58 = arith.constant 0 : index
    %162 = vector.load %arg3[%c0_57, %c20, %c0_58] : memref<1x32x256xf32, #tpu.memory_space<vmem>>, vector<1x1x256xf32>
    %163 = vector.shape_cast %162 : vector<1x1x256xf32> to vector<1x256xf32>
    %164 = vector.broadcast %16 : vector<8x1xf32> to vector<8x256xf32>
    %165 = vector.broadcast %163 : vector<1x256xf32> to vector<8x256xf32>
    %166 = arith.mulf %164, %165 : vector<8x256xf32>
    %167 = arith.addf %161, %166 : vector<8x256xf32>
    %c0_59 = arith.constant 0 : index
    %c28 = arith.constant 28 : index
    %c0_60 = arith.constant 0 : index
    %168 = vector.load %arg3[%c0_59, %c28, %c0_60] : memref<1x32x256xf32, #tpu.memory_space<vmem>>, vector<1x1x256xf32>
    %169 = vector.shape_cast %168 : vector<1x1x256xf32> to vector<1x256xf32>
    %170 = vector.broadcast %17 : vector<8x1xf32> to vector<8x256xf32>
    %171 = vector.broadcast %169 : vector<1x256xf32> to vector<8x256xf32>
    %172 = arith.mulf %170, %171 : vector<8x256xf32>
    %173 = arith.addf %167, %172 : vector<8x256xf32>
    %c0_61 = arith.constant 0 : index
    %c5 = arith.constant 5 : index
    %c0_62 = arith.constant 0 : index
    %174 = vector.load %arg3[%c0_61, %c5, %c0_62] : memref<1x32x256xf32, #tpu.memory_space<vmem>>, vector<1x1x256xf32>
    %175 = vector.shape_cast %174 : vector<1x1x256xf32> to vector<1x256xf32>
    %176 = vector.broadcast %18 : vector<8x1xf32> to vector<8x256xf32>
    %177 = vector.broadcast %175 : vector<1x256xf32> to vector<8x256xf32>
    %178 = arith.mulf %176, %177 : vector<8x256xf32>
    %179 = arith.addf %173, %178 : vector<8x256xf32>
    %c0_63 = arith.constant 0 : index
    %c13 = arith.constant 13 : index
    %c0_64 = arith.constant 0 : index
    %180 = vector.load %arg3[%c0_63, %c13, %c0_64] : memref<1x32x256xf32, #tpu.memory_space<vmem>>, vector<1x1x256xf32>
    %181 = vector.shape_cast %180 : vector<1x1x256xf32> to vector<1x256xf32>
    %182 = vector.broadcast %19 : vector<8x1xf32> to vector<8x256xf32>
    %183 = vector.broadcast %181 : vector<1x256xf32> to vector<8x256xf32>
    %184 = arith.mulf %182, %183 : vector<8x256xf32>
    %185 = arith.addf %179, %184 : vector<8x256xf32>
    %c0_65 = arith.constant 0 : index
    %c21 = arith.constant 21 : index
    %c0_66 = arith.constant 0 : index
    %186 = vector.load %arg3[%c0_65, %c21, %c0_66] : memref<1x32x256xf32, #tpu.memory_space<vmem>>, vector<1x1x256xf32>
    %187 = vector.shape_cast %186 : vector<1x1x256xf32> to vector<1x256xf32>
    %188 = vector.broadcast %20 : vector<8x1xf32> to vector<8x256xf32>
    %189 = vector.broadcast %187 : vector<1x256xf32> to vector<8x256xf32>
    %190 = arith.mulf %188, %189 : vector<8x256xf32>
    %191 = arith.addf %185, %190 : vector<8x256xf32>
    %c0_67 = arith.constant 0 : index
    %c29 = arith.constant 29 : index
    %c0_68 = arith.constant 0 : index
    %192 = vector.load %arg3[%c0_67, %c29, %c0_68] : memref<1x32x256xf32, #tpu.memory_space<vmem>>, vector<1x1x256xf32>
    %193 = vector.shape_cast %192 : vector<1x1x256xf32> to vector<1x256xf32>
    %194 = vector.broadcast %21 : vector<8x1xf32> to vector<8x256xf32>
    %195 = vector.broadcast %193 : vector<1x256xf32> to vector<8x256xf32>
    %196 = arith.mulf %194, %195 : vector<8x256xf32>
    %197 = arith.addf %191, %196 : vector<8x256xf32>
    %c0_69 = arith.constant 0 : index
    %c6 = arith.constant 6 : index
    %c0_70 = arith.constant 0 : index
    %198 = vector.load %arg3[%c0_69, %c6, %c0_70] : memref<1x32x256xf32, #tpu.memory_space<vmem>>, vector<1x1x256xf32>
    %199 = vector.shape_cast %198 : vector<1x1x256xf32> to vector<1x256xf32>
    %200 = vector.broadcast %22 : vector<8x1xf32> to vector<8x256xf32>
    %201 = vector.broadcast %199 : vector<1x256xf32> to vector<8x256xf32>
    %202 = arith.mulf %200, %201 : vector<8x256xf32>
    %203 = arith.addf %197, %202 : vector<8x256xf32>
    %c0_71 = arith.constant 0 : index
    %c14 = arith.constant 14 : index
    %c0_72 = arith.constant 0 : index
    %204 = vector.load %arg3[%c0_71, %c14, %c0_72] : memref<1x32x256xf32, #tpu.memory_space<vmem>>, vector<1x1x256xf32>
    %205 = vector.shape_cast %204 : vector<1x1x256xf32> to vector<1x256xf32>
    %206 = vector.broadcast %23 : vector<8x1xf32> to vector<8x256xf32>
    %207 = vector.broadcast %205 : vector<1x256xf32> to vector<8x256xf32>
    %208 = arith.mulf %206, %207 : vector<8x256xf32>
    %209 = arith.addf %203, %208 : vector<8x256xf32>
    %c0_73 = arith.constant 0 : index
    %c22 = arith.constant 22 : index
    %c0_74 = arith.constant 0 : index
    %210 = vector.load %arg3[%c0_73, %c22, %c0_74] : memref<1x32x256xf32, #tpu.memory_space<vmem>>, vector<1x1x256xf32>
    %211 = vector.shape_cast %210 : vector<1x1x256xf32> to vector<1x256xf32>
    %212 = vector.broadcast %24 : vector<8x1xf32> to vector<8x256xf32>
    %213 = vector.broadcast %211 : vector<1x256xf32> to vector<8x256xf32>
    %214 = arith.mulf %212, %213 : vector<8x256xf32>
    %215 = arith.addf %209, %214 : vector<8x256xf32>
    %c0_75 = arith.constant 0 : index
    %c30 = arith.constant 30 : index
    %c0_76 = arith.constant 0 : index
    %216 = vector.load %arg3[%c0_75, %c30, %c0_76] : memref<1x32x256xf32, #tpu.memory_space<vmem>>, vector<1x1x256xf32>
    %217 = vector.shape_cast %216 : vector<1x1x256xf32> to vector<1x256xf32>
    %218 = vector.broadcast %25 : vector<8x1xf32> to vector<8x256xf32>
    %219 = vector.broadcast %217 : vector<1x256xf32> to vector<8x256xf32>
    %220 = arith.mulf %218, %219 : vector<8x256xf32>
    %221 = arith.addf %215, %220 : vector<8x256xf32>
    %222 = vector.shape_cast %100 : vector<8x256xf32> to vector<8x1x256xf32>
    %223 = vector.shape_cast %221 : vector<8x256xf32> to vector<8x1x256xf32>
    %224 = tpu.concatenate %222, %223 in 1 : vector<8x1x256xf32>, vector<8x1x256xf32> -> vector<8x2x256xf32>
    %225 = vector.broadcast %27 : vector<8x1x1xf32> to vector<8x2x256xf32>
    %226 = arith.addf %224, %225 : vector<8x2x256xf32>
    %cst_77 = arith.constant 0.000000e+00 : f32
    %227 = vector.broadcast %cst_77 : f32 to vector<8x2x256xf32>
    %228 = arith.maximumf %226, %227 : vector<8x2x256xf32>
    %229 = vector.shape_cast %228 : vector<8x2x256xf32> to vector<16x256xf32>
    %c0_78 = arith.constant 0 : index
    %c32 = arith.constant 32 : index
    %c0_79 = arith.constant 0 : index
    %230 = vector.load %arg5[%c0_78, %c32, %c0_79] : memref<1x48x256xf32, #tpu.memory_space<vmem>>, vector<1x16x256xf32>
    %231 = vector.shape_cast %230 : vector<1x16x256xf32> to vector<16x256xf32>
    %232 = vector.shape_cast %229 : vector<16x256xf32> to vector<1x16x256xf32>
    tpu.vector_store %arg5[%c0_78, %c32, %c0_79], %232 {strides = array<i32>} : memref<1x48x256xf32, #tpu.memory_space<vmem>>, vector<1x16x256xf32>,
    return
  }
  func.func @transform_0(%arg0: i32, %arg1: i32) -> (i32, i32, i32) {
    %c0_i32 = arith.constant 0 : i32
    %c0_i32_0 = arith.constant 0 : i32
    return %arg0, %c0_i32, %arg1 : i32, i32, i32
  }
  func.func @transform_1(%arg0: i32, %arg1: i32) -> (i32, i32, i32) {
    %c0_i32 = arith.constant 0 : i32
    %c0_i32_0 = arith.constant 0 : i32
    return %arg0, %c0_i32, %arg1 : i32, i32, i32
  }
  func.func @transform_2(%arg0: i32, %arg1: i32) -> (i32, i32) {
    %c0_i32 = arith.constant 0 : i32
    %c0_i32_0 = arith.constant 0 : i32
    %c0_i32_1 = arith.constant 0 : i32
    return %c0_i32, %c0_i32_0 : i32, i32
  }
  func.func @transform_3(%arg0: i32, %arg1: i32) -> (i32, i32, i32) {
    %c0_i32 = arith.constant 0 : i32
    %c0_i32_0 = arith.constant 0 : i32
    return %arg0, %c0_i32, %arg1 : i32, i32, i32
  }
}

</mosaic_0001>

<bundles_post_ra>
// kernel: tpu_custom_call.1
= control target key start
LH: loop header
LB: loop body
LE: loop exit
PB: predicated region body
PF: predicated region fallthrough
CT: control target
= control target key end

     0   :  { %s2021_s0 = inlined_call_operand.hbm [shape: f32[2,32,256], index: 0, kind: input, shape index: {}]   ;;  %s2022_s1 = inlined_call_operand.hbm [shape: f32[2,32,256], index: 1, kind: input, shape index: {}]   ;;  %s2023_s2 = inlined_call_operand.hbm [shape: f32[8,21], index: 2, kind: input, shape index: {}]   ;;  %s2024_s3 = inlined_call_operand.hbm [shape: f32[2,48,256], index: 3, kind: output, shape index: {}]  }
   0x1   :  { %2030 = sst [smem:[#allocation15_spill]] %s2021_s0 }
   0x2   :  { %2031 = sst [smem:[#allocation16_spill]] %s2023_s2 }
   0x3   :  { %8 = vsyncpa [#allocation3], 0 }
   0x4   :  { %10 = vsyncpa [#allocation3 + $0x1], 0 }
   0x5   :  { %11 = vsyncpa [#allocation6], 0 }
   0x6   :  { %13 = vsyncpa [#allocation6 + $0x1], 0 }
   0x7   :  { %14 = vsyncpa [#allocation4], 0 }
   0x8   :  { %16 = vsyncpa [#allocation4 + $0x1], 0  ;;  %s1499_s12 = smov 0   ;;  %s1501_s13 = smov 0  }
   0x9   :  { %s1503_s14 = smov 0   ;;  %s1505_s15 = smov 0  }
   0xa   :  { %s1507_s16 = smov 0   ;;  %s1509_s17 = smov 0  }
   0xb LB: > { %2032 = sst [smem:[#allocation13_spill]] %s1447_s16  ;;  %s1530_s18 = sadd.s32 4294967295, %s1451_s17   ;;  %s1451_s17 = sphi %s1509_s17, %s22_s17   ;;  %s1447_s16 = sphi %s1507_s16, %s2048_s16   ;;  %s1443_s15 = sphi %s1505_s15, %s2047_s15   ;;  %s1439_s14 = sphi %s1503_s14, %s2051_s14   ;;  %s1435_s13 = sphi %s1501_s13, %s2050_s13   ;;  %s1431_s12 = sphi %s1499_s12, %s2049_s12  }
   0xc   : > { %s1097_s19 = sadd.s32 4294967294, %s1451_s17   ;;  %s43_s20 = sadd.s32 1, %s1439_s14 }
   0xd   : > { %p50_p0 = scmp.ne.s32.totalorder %s1439_s14, %s1435_s13  ;;  %p51_p1 = scmp.eq.s32.totalorder %s1451_s17, 0 }
   0xe   : > { %p56_p2 = scmp.ne.s32.totalorder %s1435_s13, %s1431_s12  ;;  %p57_p3 = scmp.eq.s32.totalorder %s1530_s18, 0 }
   0xf   : > { %p131_p4 = scmp.eq.s32.totalorder %s1530_s18, 1  ;;  %p1541_p5 = por %p51_p1, %p50_p0 }
  0x10   : > { %p137_p6 = scmp.eq.s32.totalorder %s1097_s19, 1  ;;  %p1547_p7 = por %p57_p3, %p56_p2 }
  0x11   : > { %p1551_p8 = por %p131_p4, %p50_p0  ;;  %p1098_p10 = scmp.ge.s32.totalorder %s1451_s17, 1 }
  0x12   : > { %p1555_p9 = por %p137_p6, %p56_p2  ;;  %p144_p11 = scmp.lt.s32.totalorder %s1451_s17, 3 }
  0x13   : > { %s2037_s2 = sld [smem:[#allocation16_spill]]  ;;  %s1453_s29 = smov [#allocation7]  }
  0x14   : > { %p1564_p12 = pnand %p1098_p10, %p144_p11  ;;  %s158_s30 = sshll.u32 %s1453_s29, 4  ;;  %s159_s30 = int_to_ptr.vmem [resolvable:$true] %s158_s30 }
  0x15   : > { %p1100_p13 = scmp.ge.s32.totalorder %s1451_s17, 2  ;;  %p1171_p1 = scmp.lt.s32.totalorder %s1451_s17, 2 }
  0x16   : > { %p1155_p0 = pneg %p1564_p12  ;;  %s34_s5 = sadd.s32 1, %s1447_s16 }
  0x17   : > { %p1576_p4 = pnand %p1171_p1, %p1541_p5  ;;  %p36_p6 = scmp.ge.s32.totalorder %s34_s5, 2 }
  0x18   : > { %p1156_p2 = pnand %p1155_p0, %p57_p3  ;;  %s169_s6 = sand.u32 1, %s1439_s14  }
  0x19   : > { %s156_s27 = sshll.u32 %s2037_s2, 4  ;;  %s2053_s5 = smov (%p36_p6, %s34_s5), 0  ;;  %s157_s27 = int_to_ptr.hbm [resolvable:$true] %s156_s27 }
  0x1a   : > { %1158 = dma.hbm_to_vmem [thread:$0]  (!%p1156_p2), %s157_s27, 128, %s159_s30, [#allocation6]  }
  0x1b   : > { %2040 = sst [smem:[#allocation14_spill]] %s2053_s5  ;;  %s1101_s7 = sshll.u32 %s169_s6, 6 }
  0x1c   : > { %s38_s8 = ssub.s32 %s1447_s16, %s2053_s5  ;;  %s1141_s9 = sshll.u32 %s1447_s16, 6 }
  0x1d   : > { %p41_p10 = scmp.eq.s32.totalorder %s38_s8, 0  ;;  %s2041_s0 = sld [smem:[#allocation15_spill]] }
  0x1e   : > { %s173_s21 = scalar_lea.vmem [#allocation2], %s1101_s7  ;;  %s170_s29 = scalar_lea.sflag [#allocation3], %s169_s6 }
  0x1f   : > { %s183_s25 = sshll.u32 %s173_s21, 4  ;;  %s1454_s30 = smov 256   ;;  %s184_s25 = int_to_ptr.vmem [resolvable:$true] %s183_s25 }
  0x20   : > { %s1593_s26 = scalar_select %p41_p10, %s1439_s14, %s43_s20  }
  0x21   : > { %s1455_s2 = smov 16   ;;  %s204_s10 = scalar_lea.hbm %s2022_s1, %s1141_s9 }
  0x22   : > { %s197_s11 = scalar_lea.vmem [#allocation5], %s1101_s7  ;;  %s205_s16 = sshll.u32 %s204_s10, 4  ;;  %s206_s16 = int_to_ptr.hbm [resolvable:$true] %s205_s16 }
  0x23   : > { %s180_s19 = scalar_lea.hbm %s2041_s0, %s1141_s9  ;;  %s207_s0 = sshll.u32 %s197_s11, 4  ;;  %s208_s0 = int_to_ptr.vmem [resolvable:$true] %s207_s0 }
  0x24   : > { %s181_s27 = sshll.u32 %s180_s19, 4  ;;  %s193_s20 = sand.u32 1, %s1451_s17   ;;  %s182_s27 = int_to_ptr.hbm [resolvable:$true] %s181_s27 }
  0x25   : > { %1162 = dma.hbm_to_vmem [thread:$0]  (!%p1576_p4), %s182_s27, 1024, %s184_s25, %s170_s29, %s1454_s30, %s1454_s30, %s1455_s2  }
  0x26   : > { %s194_s21 = scalar_lea.sflag [#allocation6], %s193_s20  ;;  %219 = sbr.rel (%p1564_p12) target bundleno = 297 (0x129), region = 32 }
  0x27   : > { %1165 = dma.hbm_to_vmem [thread:$0]  (!%p1576_p4), %s206_s16, 1024, %s208_s0, %s194_s21, %s1454_s30, %s1454_s30, %s1455_s2  }
  0x28   : > { %s1606_s6 = sand.u32 (!%p1564_p12), 1, %s1435_s13  }
  0x29   : > { %s1108_s5 = sshll.u32 (!%p1564_p12), %s1606_s6, 6  ;;  %s222_s9 = scalar_lea.sflag (!%p1564_p12), [#allocation3], %s1606_s6 }
  0x2a   : > { %s1610_s7 = scalar_lea.vmem (!%p1564_p12), [#allocation2], %s1108_s5 }
  0x2b   : > { %1414 = dma.done.wait (%p1547_p7), %s222_s9, 1024  }
  0x2c   : > { %1416 = vsyncadd (%p1547_p7), %s222_s9, 4294966272  ;;  %s231_s0 = sand.u32 1, %s1530_s18   ;;  %s1617_s16 = scalar_lea.vmem [#allocation5], %s1108_s5 }
  0x2d   : > { %s232_s2 = scalar_lea.sflag [#allocation6], %s231_s0 }
  0x2e   : > { %1418 = dma.done.wait (%p1547_p7), %s232_s2, 1024  }
  0x2f   : > { %1420 = vsyncadd (%p1547_p7), %s232_s2, 4294966272 }
  0x30   : > { %1422 = dma.done.wait (%p57_p3), [#allocation6], 128  }
  0x31   : > { %1424 = vsyncadd (%p57_p3), [#allocation6], 4294967168  ;;  %v1456_v0 = vmov 10   ;;  %v1457_v1 = vmov 8   ;;  %v1458_v2 = vmov 12   ;;  %v1627_v3 = vld [vmem:[#allocation7] sm:$0xff] }
  0x32   : > { %1250 = vset.pattern.permute.xlu1 %v1456_v0  ;;  %1248 = vset.pattern.permute.xlu0 %v1457_v1  ;;  %v1459_v4 = vmov 11   ;;  %v1460_v5 = vmov 9   ;;  %v1461_v6 = vmov 13   ;;  %v1462_v7 = vmov 14   ;;  %s1143_s18 = smul.u32 96, %s1606_s6  ;;  %s1381_s20 = scalar_lea.hbm %s2024_s3, 192 }
  0x33   : > { %1252 = vset.pattern.permute.xlu2 %v1458_v2  ;;  %329 = vperm.xlu1 %1250, %v1627_v3   ;;  %v1463_v8 = vmov 16   ;;  %v1464_v9 = vmov 15   ;;  %v1465_v10 = vmov 17   ;;  %v1466_v11 = vmov 2   ;;  %s1144_s28 = smul.u32 96, %s1443_s15  ;;  %s957_s15 = scalar_lea.sflag [#allocation4], %s1606_s6 }
  0x34   : > { %299 = vperm.xlu0 %1248, %v1627_v3   ;;  %359 = vperm.xlu2 %1252, %v1627_v3   ;;  %v1467_v12 = vmov 18   ;;  %v1468_v13 = vmov 0   ;;  %v1469_v14 = vmov 7   ;;  %v1470_v15 = vmov 1   ;;  %s1932_s22 = scalar_lea.vmem [#allocation8], %s1143_s18 }
  0x35   : > { %v1471_v16 = vmov 3   ;;  %v1472_v17 = vmov 20   ;;  %v1473_v18 = vmov 4   ;;  %v1474_v19 = vmov 5   ;;  %s970_s25 = scalar_lea.hbm %s2024_s3, %s1144_s28  ;;  %s971_s27 = sshll.u32 %s1932_s22, 4  ;;  %s972_s27 = int_to_ptr.vmem [resolvable:$true] %s971_s27 }
  0x36   : > { %v1475_v20 = vmov 6   ;;  %v292_v21 = vrot.slane %v1627_v3, 3  ;;  %v824_v23 = vperm.slane %v1627_v3, 0  ;;  %v1476_v24 = vmov 19   ;;  %s973_s29 = sshll.u32 %s970_s25, 4  ;;  %s974_s29 = int_to_ptr.hbm [resolvable:$true] %s973_s29 }
  0x37   : > { %v290_v25 = vrot.slane %v1627_v3, 1  ;;  %v291_v26 = vrot.slane %v1627_v3, 2  ;;  %v293_v29 = vrot.slane %v1627_v3, 4  ;;  %v294_v30 = vrot.slane %v1627_v3, 5  ;;  %s1375_s30 = sshra.s32 %s974_s29, 4  ;;  %s1376_s30 = int_to_ptr.hbm [resolvable:$true] %s1375_s30 }
  0x38   : > { %v827_v22 = vperm.slane %v292_v21, 0  ;;  %v295_v33 = vrot.slane %v1627_v3, 6  ;;  %v296_v34 = vrot.slane %v1627_v3, 7  ;;  %v297_v44 = vld [vmem:[%s1617_s16] ss:$8 sm:$0x3]  ;;  %p1382_p11 = scmp.lt.s32.totalorder %s1376_s30, %s2024_s3 }
  0x39   : > { %v825_v27 = vperm.slane %v290_v25, 0  ;;  %v826_v28 = vperm.slane %v291_v26, 0  ;;  %v828_v31 = vperm.slane %v293_v29, 0  ;;  %v829_v32 = vperm.slane %v294_v30, 0  ;;  %s1377_s8 = scalar_lea.hbm %s1376_s30, 96 }
  0x3a   : > { %v830_v35 = vperm.slane %v295_v33, 0  ;;  %v831_v36 = vperm.slane %v296_v34, 0  ;;  %v1111_v45 = vld [vmem:[%s1617_s16 + $0x10] ss:$8 sm:$0x3]  ;;  %v304_v47 = vperm.slane %v297_v44, 1  ;;  %p1378_p3 = scmp.ne.s32.totalorder %s1376_s30, %s1377_s8  ;;  %p1383_p12 = scmp.lt.s32.totalorder %s1381_s20, %s1377_s8 }
  0x3b   : > { %1251 = vset.pattern.permute.xlu1 %v1459_v4  ;;  %v319_v48 = vperm.slane %v1111_v45, 1  ;;  %v1112_v50 = vld [vmem:[%s1617_s16 + $0x20] ss:$8 sm:$0x3]  ;;  %v303_v55 = vperm.slane %v297_v44, 0  ;;  %v318_v56 = vperm.slane %v1111_v45, 0 }
  0x3c   : > { %1249 = vset.pattern.permute.xlu0 %v1460_v5  ;;  %344 = vperm.xlu1 %1251, %v1627_v3   ;;  %v334_v54 = vperm.slane %v1112_v50, 1  ;;  %v1113_v57 = vld [vmem:[%s1617_s16 + $0x30] ss:$8 sm:$0x3]  ;;  %v333_v4 = vperm.slane %v1112_v50, 0  ;;  %vm708_vm0 = vcmask 1042434   ;;  %p1379_p5 = pnand %p1378_p3, %p1551_p8  ;;  %p1384_p0 = por %p1383_p12, %p1382_p11 }
  0x3d   : > { %314 = vperm.xlu0 %1249, %v1627_v3   ;;  %1253 = vset.pattern.permute.xlu2 %v1461_v6  ;;  %v1684_v59 = vld [vmem:[%s1617_s16 + $0x1] ss:$8 sm:$0x3]  ;;  %v1687_v61 = vld [vmem:[%s1617_s16 + $0x5] ss:$8 sm:$0x3] }
  0x3e   : > { %374 = vperm.xlu2 %1253, %v1627_v3   ;;  %v349_v0 = vperm.slane %v1113_v57, 1  ;;  %v1698_v6 = vld [vmem:[%s1617_s16 + $0x12] ss:$8 sm:$0x3]  ;;  %vm717_vm1 = vcmask 1045509   ;;  %vm703_vm2 = vcmask 1040384   ;;  %p1380_p7 = pneg %p1379_p5 }
  0x3f   : > { %v1721_v25 = vld [vmem:[%s1617_s16 + $0x32] ss:$8 sm:$0x3]  ;;  %v1724_v26 = vld [vmem:[%s1617_s16 + $0x21] ss:$8 sm:$0x3] }
  0x40   : > { %v1738_v34 = vld [vmem:[%s1617_s16 + $0x24] ss:$8 sm:$0x3]  ;;  %v2029_v50 = vperm.slane %v1721_v25, 1  ;;  %vm723_vm3 = vcmask 1046528   ;;  %vm705_vm4 = vcmask 1041409   ;;  %p1385_p1 = pnand %p1384_p0, %p1380_p7 }
  0x41   : > { %vm714_vm5 = vcmask 1044484   ;;  %vm720_vm6 = vcmask 1046534   ;;  %vm711_vm7 = vcmask 1043459   ;;  %vm920_vm8 = vcmask 1041408  }
  0x44   : > { %1254 = vset.pattern.permute.xlu1 %v1462_v7  ;;  %v1701_v7 = vld [vmem:[%s1617_s16 + $0x2] ss:$8 sm:$0x3] }
  0x45   : > { %1256 = vset.pattern.permute.xlu0 %v1463_v8  ;;  %389 = vperm.xlu1 %1254, %v1627_v3   ;;  %v424_v21 = vperm.slane %v1701_v7, 1 }
  0x46   : > { %419 = vperm.xlu0 %1256, %v1627_v3   ;;  %1255 = vset.pattern.permute.xlu2 %v1464_v9  ;;  %v363_v9 = vperm.slane %v1684_v59, 0 }
  0x47   : > { %404 = vperm.xlu2 %1255, %v1627_v3  }
  0x4d   : > { %1257 = vset.pattern.permute.xlu1 %v1465_v10  ;;  %v364_v10 = vperm.slane %v1684_v59, 1 }
  0x4e   : > { %1261 = vset.pattern.permute.xlu0 %v1466_v11  ;;  %434 = vperm.xlu1 %1257, %v1627_v3   ;;  %v615_v11 = vperm.slane %v1687_v61, 0 }
  0x4f   : > { %493 = vperm.xlu0 %1261, %v1627_v3   ;;  %1258 = vset.pattern.permute.xlu2 %v1467_v12  ;;  %v616_v12 = vperm.slane %v1687_v61, 1 }
  0x50   : > { %449 = vperm.xlu2 %1258, %v1627_v3  }
  0x56   : > { %1259 = vset.pattern.permute.xlu1 %v1468_v13 }
  0x57   : > { %1266 = vset.pattern.permute.xlu0 %v1469_v14  ;;  %477 = vperm.xlu1 %1259, %v1627_v3   ;;  %v1709_v14 = vld [vmem:[%s1617_s16 + $0x15] ss:$8 sm:$0x3] }
  0x58   : > { %556 = vperm.xlu0 %1266, %v1627_v3   ;;  %1260 = vset.pattern.permute.xlu2 %v1470_v15  ;;  %v348_v15 = vperm.slane %v1113_v57, 0  ;;  %v1749_v57 = vld [vmem:[%s1617_s16 + $0x31] ss:$8 sm:$0x3] }
  0x59   : > { %485 = vperm.xlu2 %1260, %v1627_v3  }
  0x5f   : > { %1262 = vset.pattern.permute.xlu1 %v1471_v16 }
  0x60   : > { %1270 = vset.pattern.permute.xlu0 %v1472_v17  ;;  %501 = vperm.xlu1 %1262, %v1627_v3  }
  0x61   : > { %1263 = vset.pattern.permute.xlu2 %v1473_v18  ;;  %845 = vperm.xlu0 %1270, %v827_v22   ;;  %v438_v18 = vperm.slane %v1698_v6, 0 }
  0x62   : > { %511 = vperm.xlu2 %1263, %v1627_v3  }
  0x68   : > { %1264 = vset.pattern.permute.xlu1 %v1474_v19  ;;  %v439_v19 = vperm.slane %v1698_v6, 1  ;;  %v1134_v6 = vld [vmem:[%s1617_s16 + $0x6] ss:$8 sm:$0x3] }
  0x69   : > { %526 = vperm.xlu1 %1264, %v1627_v3  }
  0x6a   : > { %1265 = vset.pattern.permute.xlu2 %v1475_v20  ;;  %v423_v20 = vperm.slane %v1701_v7, 0 }
  0x6b   : > { %541 = vperm.xlu2 %1265, %v1627_v3  }
  0x71   : > { %1267 = vset.pattern.permute.xlu1 %v1476_v24  ;;  %v1718_v24 = vld [vmem:[%s1617_s16 + $0x22] ss:$8 sm:$0x3] }
  0x72   : > { %464 = vperm.xlu1 %1267, %v1627_v3   ;;  %v1695_v3 = vld [vmem:[%s1617_s16 + $0x11] ss:$8 sm:$0x3]  ;;  %v2028_v45 = vperm.slane %v1718_v24, 0 }
  0x73   : > { %1268 = vset.pattern.permute.xlu2 %v1472_v17  ;;  %v378_v13 = vperm.slane %v1695_v3, 0 }
  0x74   : > { %833 = vperm.xlu2 %1268, %v824_v23  }
  0x7a   : > { %1269 = vset.pattern.permute.xlu1 %v1472_v17 }
  0x7b   : > { %837 = vperm.xlu1 %1269, %v825_v27  }
  0x7c   : > { %841 = vperm.xlu2 %1268, %v826_v28  }
  0x83   : > { %849 = vperm.xlu1 %1269, %v828_v31  }
  0x84   : > { %853 = vperm.xlu2 %1268, %v829_v32   ;;  %v379_v32 = vperm.slane %v1695_v3, 1 }
  0x8b   : > { %857 = vperm.xlu1 %1269, %v830_v35  }
  0x8c   : > { %861 = vperm.xlu2 %1268, %v831_v36  }
  0x8e   : > { %v1657_v37 = vpop.permute.xlu2 %359 }
  0x8f   : > { %v368_v31 = vmul.f32 %v364_v10, %v1657_v37 }
  0x98   : > { %v1661_v39 = vpop.permute.xlu2 %374 }
  0xa1   : > { %v1665_v41 = vpop.permute.xlu2 %404 }
  0xa5   : > { %v1659_v38 = vpop.permute.xlu1 %329 }
  0xa6   : > { %v1667_v42 = vpop.permute.xlu0 %299  ;;  %v338_v62 = vmul.f32 %v334_v54, %v1659_v38  ;;  %v337_v22 = vmul.f32 %v333_v4, %v1659_v38  ;;  %v394_v54 = vperm.slane %v1724_v26, 1  ;;  %v594_v4 = vperm.slane %v1738_v34, 1 }
  0xa7   : > { %v308_v52 = vmul.f32 %v304_v47, %v1667_v42  ;;  %v307_v63 = vmul.f32 %v303_v55, %v1667_v42  ;;  %v454_v47 = vperm.slane %v1718_v24, 1 }
  0xaa   : > { %v1673_v46 = vpop.permute.xlu2 %449 }
  0xae   : > { %v1663_v40 = vpop.permute.xlu1 %344 }
  0xaf   : > { %v1675_v49 = vpop.permute.xlu0 %314  ;;  %v353_v16 = vmul.f32 %v349_v0, %v1663_v40  ;;  %v383_v0 = vmul.f32 %v379_v32, %v1661_v39 }
  0xb0   : > { %v323_v53 = vmul.f32 %v319_v48, %v1675_v49  ;;  %v322_v1 = vmul.f32 %v318_v56, %v1675_v49  ;;  %v2027_v48 = vperm.slane %v1721_v25, 0  ;;  %v1122_v56 = vld [vmem:[%s1617_s16 + $0x3] ss:$8 sm:$0x3] }
  0xb1   : > { %v515_v10 = vperm.slane %v1122_v56, 0 }
  0xb2   : > { %v325_v58 = vadd.f32 %v323_v53, %v308_v52  ;;  %v324_v17 = vadd.f32 %v322_v1, %v307_v63  ;;  %v352_v53 = vmul.f32 %v348_v15, %v1663_v40  ;;  %v593_v1 = vperm.slane %v1738_v34, 0 }
  0xb3   : > { %v486_v60 = vpop.permute.xlu2 %485  ;;  %v516_v15 = vperm.slane %v1122_v56, 1 }
  0xb4   : > { %v340_v5 = vadd.f32 %v338_v62, %v325_v58  ;;  %v488_v27 = vmul.f32 %v486_v60, %v438_v18  ;;  %v489_v28 = vmul.f32 %v486_v60, %v439_v19  ;;  %v339_v35 = vadd.f32 %v337_v22, %v324_v17  ;;  %v1123_v22 = vld [vmem:[%s1617_s16 + $0x13] ss:$8 sm:$0x3] }
  0xb5   : > { %v597_v7 = vmul.f32 %v593_v1, %v1659_v38 }
  0xb6   : > { %v355_v23 = vadd.f32 %v353_v16, %v340_v5  ;;  %v354_v5 = vadd.f32 %v352_v53, %v339_v35 }
  0xb7   : > { %v1669_v43 = vpop.permute.xlu1 %389 }
  0xb8   : > { %v1692_v2 = vpop.permute.xlu0 %419  ;;  %v370_v55 = vadd.f32 %v368_v31, %v355_v23  ;;  %v367_v23 = vmul.f32 %v363_v9, %v1657_v37  ;;  %v393_v31 = vperm.slane %v1724_v26, 0 }
  0xba   : > { %v369_v53 = vadd.f32 %v367_v23, %v354_v5 }
  0xbc   : > { %v512_v44 = vpop.permute.xlu2 %511 }
  0xbd   : > { %v519_v52 = vmul.f32 %v515_v10, %v512_v44  ;;  %v520_v33 = vmul.f32 %v516_v15, %v512_v44 }
  0xc0   : > { %v1678_v51 = vpop.permute.xlu1 %434 }
  0xc1   : > { %v494_v36 = vpop.permute.xlu0 %493 }
  0xc2   : > { %v496_v60 = vmul.f32 %v494_v36, %v2028_v45  ;;  %v497_v62 = vmul.f32 %v494_v36, %v454_v47  ;;  %v531_v45 = vperm.slane %v1123_v22, 1 }
  0xc9   : > { %v478_v8 = vpop.permute.xlu1 %477 }
  0xca   : > { %v480_v29 = vmul.f32 %v478_v8, %v423_v20  ;;  %v481_v30 = vmul.f32 %v478_v8, %v424_v21  ;;  %v1124_v8 = vld [vmem:[%s1617_s16 + $0x23] ss:$8 sm:$0x3] }
  0xcb   : > { %v545_v32 = vperm.slane %v1124_v8, 0  ;;  %v546_v56 = vperm.slane %v1124_v8, 1  ;;  %v397_v8 = vmul.f32 %v393_v31, %v1669_v43 }
  0xcc   : > { %v490_v58 = vadd.f32 %v488_v27, %v480_v29  ;;  %v491_v59 = vadd.f32 %v489_v28, %v481_v30  ;;  %v409_v27 = vperm.slane %v1749_v57, 1  ;;  %v385_v28 = vadd.f32 %v383_v0, %v370_v55  ;;  %v1126_v30 = vld [vmem:[%s1617_s16 + $0x4] ss:$8 sm:$0x3] }
  0xcd   : > { %v398_v29 = vmul.f32 %v394_v54, %v1669_v43  ;;  %v382_v54 = vmul.f32 %v378_v13, %v1661_v39  ;;  %v571_v55 = vperm.slane %v1126_v30, 0  ;;  %v1127_v13 = vld [vmem:[%s1617_s16 + $0x14] ss:$8 sm:$0x3] }
  0xce   : > { %v498_v35 = vadd.f32 %v496_v60, %v490_v58  ;;  %v499_v36 = vadd.f32 %v497_v62, %v491_v59  ;;  %v413_v26 = vmul.f32 %v409_v27, %v1665_v41  ;;  %v408_v59 = vperm.slane %v1749_v57, 0  ;;  %v1776_v60 = vld [vmem:[%s1617_s16 + $0x35] ss:$8 sm:$0x3]  ;;  %v542_v62 = vpop.permute.xlu2 %541 }
  0xcf   : > { %v400_v58 = vadd.f32 %v398_v29, %v385_v28  ;;  %v384_v44 = vadd.f32 %v382_v54, %v369_v53  ;;  %v549_v10 = vmul.f32 %v545_v32, %v542_v62  ;;  %v550_v15 = vmul.f32 %v546_v56, %v542_v62 }
  0xd0   : > { %v572_v28 = vperm.slane %v1126_v30, 1  ;;  %v648_v57 = vperm.slane %v1776_v60, 0  ;;  %v575_v54 = vmul.f32 %v571_v55, %v1667_v42  ;;  %v458_v55 = vmul.f32 %v454_v47, %v1673_v46 }
  0xd1   : > { %v415_v29 = vadd.f32 %v413_v26, %v400_v58 }
  0xd2   : > { %v502_v63 = vpop.permute.xlu1 %501  ;;  %v576_v62 = vmul.f32 %v572_v28, %v1667_v42 }
  0xd3   : > { %v504_v16 = vmul.f32 %v502_v63, %v2027_v48  ;;  %v505_v17 = vmul.f32 %v502_v63, %v2029_v50  ;;  %v530_v48 = vperm.slane %v1123_v22, 0  ;;  %v1125_v63 = vld [vmem:[%s1617_s16 + $0x33] ss:$8 sm:$0x3] }
  0xd4   : > { %v560_v0 = vperm.slane %v1125_v63, 0  ;;  %v561_v5 = vperm.slane %v1125_v63, 1  ;;  %v649_v63 = vperm.slane %v1776_v60, 1 }
  0xd5   : > { %v506_v9 = vadd.f32 %v504_v16, %v498_v35  ;;  %v507_v50 = vadd.f32 %v505_v17, %v499_v36  ;;  %v557_v16 = vpop.permute.xlu0 %556  ;;  %v428_v35 = vmul.f32 %v424_v21, %v1692_v2  ;;  %v1129_v36 = vld [vmem:[%s1617_s16 + $0x34] ss:$8 sm:$0x3]  ;;  %v619_v21 = vmul.f32 %v615_v11, %v1657_v37 }
  0xd6   : > { %v564_v32 = vmul.f32 %v560_v0, %v557_v16  ;;  %v565_v56 = vmul.f32 %v561_v5, %v557_v16  ;;  %v604_v26 = vperm.slane %v1129_v36, 0  ;;  %v605_v58 = vperm.slane %v1129_v36, 1 }
  0xd7   : > { %v521_v17 = vadd.f32 %v519_v52, %v506_v9  ;;  %v522_v22 = vadd.f32 %v520_v33, %v507_v50  ;;  %v412_v33 = vmul.f32 %v408_v59, %v1665_v41  ;;  %v399_v50 = vadd.f32 %v397_v8, %v384_v44  ;;  %v1796_v59 = vld [vmem:[%s1617_s16 + $0x26] ss:$8 sm:$0x3] }
  0xd8   : > { %v443_v52 = vmul.f32 %v439_v19, %v1678_v51  ;;  %v430_v0 = vadd.f32 %v428_v35, %v415_v29  ;;  %v427_v11 = vmul.f32 %v423_v20, %v1692_v2  ;;  %v598_v20 = vmul.f32 %v594_v4, %v1659_v38 }
  0xd9   : > { %v681_v47 = vperm.slane %v1796_v59, 0  ;;  %v608_v34 = vmul.f32 %v604_v26, %v1663_v40  ;;  %v609_v38 = vmul.f32 %v605_v58, %v1663_v40  ;;  %v682_v4 = vperm.slane %v1796_v59, 1 }
  0xda   : > { %v445_v42 = vadd.f32 %v443_v52, %v430_v0  ;;  %v652_v58 = vmul.f32 %v648_v57, %v1665_v41  ;;  %v653_v59 = vmul.f32 %v649_v63, %v1665_v41 }
  0xdb   : > { %v527_v3 = vpop.permute.xlu1 %526  ;;  %v685_v0 = vmul.f32 %v681_v47, %v1673_v46 }
  0xdc   : > { %v534_v23 = vmul.f32 %v530_v48, %v527_v3  ;;  %v535_v27 = vmul.f32 %v531_v45, %v527_v3  ;;  %v582_v48 = vperm.slane %v1127_v13, 0  ;;  %v583_v45 = vperm.slane %v1127_v13, 1  ;;  %v1132_v13 = vld [vmem:[%s1617_s16 + $0x25] ss:$8 sm:$0x3] }
  0xdd   : > { %v460_v29 = vadd.f32 %v458_v55, %v445_v42 }
  0xde   : > { %v536_v53 = vadd.f32 %v534_v23, %v521_v17  ;;  %v537_v31 = vadd.f32 %v535_v27, %v522_v22  ;;  %v586_v19 = vmul.f32 %v582_v48, %v1675_v49  ;;  %v587_v8 = vmul.f32 %v583_v45, %v1675_v49  ;;  %v1831_v27 = vpop.permute.xlu2 %833 }
  0xdf   : > { %v620_v49 = vmul.f32 %v616_v12, %v1657_v37  ;;  %v442_v17 = vmul.f32 %v438_v18, %v1678_v51  ;;  %v2042_v37 = vperm.slane %v1721_v25, 1  ;;  %v2043_v12 = vperm.slane %v1709_v14, 0  ;;  %v1135_v18 = vld [vmem:[%s1617_s16 + $0x16] ss:$8 sm:$0x3] }
  0xe0   : > { %v551_v30 = vadd.f32 %v549_v10, %v536_v53  ;;  %v552_v9 = vadd.f32 %v550_v15, %v537_v31  ;;  %v414_v10 = vadd.f32 %v412_v33, %v399_v50  ;;  %v2044_v53 = vperm.slane %v1709_v14, 1 }
  0xe1   : > { %v630_v1 = vmul.f32 %v2043_v12, %v1661_v39  ;;  %v2045_v33 = vperm.slane %v1718_v24, 0  ;;  %v671_v26 = vperm.slane %v1135_v18, 1 }
  0xe2   : > { %v566_v5 = vadd.f32 %v564_v32, %v551_v30  ;;  %v567_v44 = vadd.f32 %v565_v56, %v552_v9  ;;  %v429_v28 = vadd.f32 %v427_v11, %v414_v10  ;;  %v631_v31 = vmul.f32 %v2044_v53, %v1661_v39 }
  0xe3   : > { %v637_v32 = vperm.slane %v1132_v13, 0  ;;  %v638_v56 = vperm.slane %v1132_v13, 1  ;;  %v457_v40 = vmul.f32 %v2045_v33, %v1673_v46  ;;  %v659_v30 = vperm.slane %v1134_v6, 0 }
  0xe4   : > { %v577_v15 = vadd.f32 %v575_v54, %v566_v5  ;;  %v578_v3 = vadd.f32 %v576_v62, %v567_v44  ;;  %v1806_v16 = vpop.permute.xlu1 %464  ;;  %v444_v48 = vadd.f32 %v442_v17, %v429_v28  ;;  %v660_v9 = vperm.slane %v1134_v6, 1 }
  0xe5   : > { %v473_v61 = vmul.f32 %v2042_v37, %v1806_v16  ;;  %v670_v54 = vperm.slane %v1135_v18, 0  ;;  %v2046_v62 = vperm.slane %v1721_v25, 0  ;;  %v641_v5 = vmul.f32 %v637_v32, %v1669_v43  ;;  %v1137_v25 = vld [vmem:[%s1617_s16 + $0x36] ss:$8 sm:$0x3] }
  0xe6   : > { %v588_v22 = vadd.f32 %v586_v19, %v577_v15  ;;  %v589_v23 = vadd.f32 %v587_v8, %v578_v3  ;;  %v642_v44 = vmul.f32 %v638_v56, %v1669_v43  ;;  %v459_v19 = vadd.f32 %v457_v40, %v444_v48  ;;  %v1856_v15 = vpop.permute.xlu2 %841 }
  0xe7   : > { %v475_v52 = vadd.f32 %v473_v61, %v460_v29  ;;  %v472_v24 = vmul.f32 %v2046_v62, %v1806_v16  ;;  %v663_v57 = vmul.f32 %v659_v30, %v1692_v2  ;;  %v674_v55 = vmul.f32 %v670_v54, %v1678_v51 }
  0xe8   : > { %v599_v35 = vadd.f32 %v597_v7, %v588_v22  ;;  %v600_v36 = vadd.f32 %v598_v20, %v589_v23  ;;  %v675_v42 = vmul.f32 %v671_v26, %v1678_v51  ;;  %v693_v7 = vperm.slane %v1137_v25, 1 }
  0xe9   : > { %v702_v60 = vrot.slane %v475_v52, 7  ;;  %v474_v41 = vadd.f32 %v472_v24, %v459_v19  ;;  %v686_v22 = vmul.f32 %v682_v4, %v1673_v46 }
  0xea   : > { %v610_v45 = vadd.f32 %v608_v34, %v599_v35  ;;  %v611_v50 = vadd.f32 %v609_v38, %v600_v36  ;;  %v697_v36 = vmul.f32 %v693_v7, %v1806_v16 }
  0xeb   : > { %v718_v20 = vsel %vm717_vm1, %v474_v41, %v702_v60  ;;  %v724_v17 = vsel %vm723_vm3, %v702_v60, %v474_v41  ;;  %v706_v51 = vsel %vm705_vm4, %v474_v41, %v702_v60  ;;  %v704_v23 = vsel %vm703_vm2, %v474_v41, %v702_v60 }
  0xec   : > { %v621_v39 = vadd.f32 %v619_v21, %v610_v45  ;;  %v622_v14 = vadd.f32 %v620_v49, %v611_v50  ;;  %v664_v21 = vmul.f32 %v660_v9, %v1692_v2  ;;  %v709_v49 = vsel %vm708_vm0, %v474_v41, %v702_v60 }
  0xed   : > { %v692_v2 = vperm.slane %v1137_v25, 0  ;;  %v710_v37 = vrot.slane %v709_v49, 2  ;;  %v715_v61 = vsel %vm714_vm5, %v474_v41, %v702_v60  ;;  %v719_v34 = vrot.slane %v718_v20, 5 }
  0xee   : > { %v632_v8 = vadd.f32 %v630_v1, %v621_v39  ;;  %v633_v11 = vadd.f32 %v631_v31, %v622_v14  ;;  %v721_v38 = vsel %vm720_vm6, %v474_v41, %v702_v60  ;;  %v725_v18 = vrot.slane %v724_v17, 7  ;;  %v854_v45 = vpop.permute.xlu2 %853 }
  0xef   : > { %v696_v6 = vmul.f32 %v692_v2, %v1806_v16  ;;  %v707_v28 = vrot.slane %v706_v51, 1  ;;  %v716_v46 = vrot.slane %v715_v61, 4  ;;  %v744_v4 = vperm.slane %v704_v23, 0  ;;  %v272_v61 = vld [vmem:[%s1610_s7] sm:$0xff] }
  0xf0   : > { %v643_v63 = vadd.f32 %v641_v5, %v632_v8  ;;  %v644_v10 = vadd.f32 %v642_v44, %v633_v11  ;;  %v745_v53 = vperm.slane %v704_v23, 1  ;;  %v748_v31 = vperm.slane %v710_v37, 0  ;;  %280 = vst [vmem:[%s1932_s22] sm:$0xff] %v272_v61 }
  0xf1   : > { %v722_v32 = vrot.slane %v721_v38, 6  ;;  %v749_v33 = vperm.slane %v710_v37, 1  ;;  %v754_v40 = vperm.slane %v719_v34, 0  ;;  %v1869_v48 = vsel %vm711_vm7, %v474_v41, %v702_v60 }
  0xf2   : > { %v654_v43 = vadd.f32 %v652_v58, %v643_v63  ;;  %v655_v3 = vadd.f32 %v653_v59, %v644_v10  ;;  %v755_v50 = vperm.slane %v719_v34, 1  ;;  %v758_v52 = vperm.slane %v725_v18, 0  ;;  %v1879_v58 = vpop.permute.xlu1 %837 }
  0xf3   : > { %v759_v30 = vperm.slane %v725_v18, 1  ;;  %v1871_v9 = vperm.slane %v707_v28, 0  ;;  %v1877_v26 = vperm.slane %v707_v28, 1  ;;  %v1881_v39 = vperm.slane %v716_v46, 0 }
  0xf4   : > { %v665_v47 = vadd.f32 %v663_v57, %v654_v43  ;;  %v666_v13 = vadd.f32 %v664_v21, %v655_v3  ;;  %v1883_v14 = vperm.slane %v716_v46, 1  ;;  %v1885_v62 = vperm.slane %v722_v32, 0 }
  0xf5   : > { %v1887_v24 = vperm.slane %v722_v32, 1  ;;  %v713_v59 = vrot.slane %v1869_v48, 3 }
  0xf6   : > { %v676_v12 = vadd.f32 %v674_v55, %v665_v47  ;;  %v677_v1 = vadd.f32 %v675_v42, %v666_v13  ;;  %v862_v28 = vpop.permute.xlu2 %861 }
  0xf8   : > { %v687_v29 = vadd.f32 %v685_v0, %v676_v12  ;;  %v688_v35 = vadd.f32 %v686_v22, %v677_v1  ;;  %v273_v12 = vld [vmem:[%s1610_s7 + $0x8] sm:$0xff]  ;;  %v274_v1 = vld [vmem:[%s1610_s7 + $0x10] sm:$0xff] }
  0xf9   : > { %281 = vst [vmem:[%s1932_s22 + $0x8] sm:$0xff] %v273_v12 }
  0xfa   : > { %v699_v56 = vadd.f32 %v697_v36, %v688_v35  ;;  %v1873_v54 = vadd.f32 %v696_v6, %v687_v29  ;;  %v275_v29 = vld [vmem:[%s1610_s7 + $0x18] sm:$0xff]  ;;  %282 = vst [vmem:[%s1932_s22 + $0x10] sm:$0xff] %v274_v1 }
  0xfb   : > { %283 = vst [vmem:[%s1932_s22 + $0x18] sm:$0xff] %v275_v29 }
  0xfc   : > { %v1875_v16 = vrot.slane %v699_v56, 7 }
  0xfe   : > { %v729_v0 = vsel %vm703_vm2, %v1873_v54, %v1875_v16  ;;  %v732_v5 = vsel %vm708_vm0, %v1873_v54, %v1875_v16  ;;  %v738_v44 = vsel %vm717_vm1, %v1873_v54, %v1875_v16  ;;  %v742_v19 = vsel %vm723_vm3, %v1875_v16, %v1873_v54 }
  0xff   : > { %v733_v8 = vrot.slane %v732_v5, 2  ;;  %v739_v11 = vrot.slane %v738_v44, 5  ;;  %v776_v60 = vperm.slane %v729_v0, 0  ;;  %v777_v57 = vperm.slane %v729_v0, 1 }
 0x100   : > { %v743_v21 = vrot.slane %v742_v19, 7  ;;  %v730_v55 = vsel %vm705_vm4, %v1873_v54, %v1875_v16  ;;  %v736_v25 = vsel %vm714_vm5, %v1873_v54, %v1875_v16  ;;  %v1912_v41 = vsel %vm720_vm6, %v1873_v54, %v1875_v16 }
 0x101   : > { %v780_v63 = vperm.slane %v733_v8, 0  ;;  %v781_v10 = vperm.slane %v733_v8, 1  ;;  %v786_v42 = vperm.slane %v739_v11, 0  ;;  %v787_v43 = vperm.slane %v739_v11, 1 }
 0x102   : > { %v790_v3 = vperm.slane %v743_v21, 0  ;;  %v791_v49 = vperm.slane %v743_v21, 1  ;;  %v808_v2 = vsel %vm703_vm2, %v744_v4, %v776_v60  ;;  %v809_v7 = vsel %vm703_vm2, %v745_v53, %v777_v57  ;;  %v850_v4 = vpop.permute.xlu1 %849  ;;  %v276_v53 = vld [vmem:[%s1610_s7 + $0x20] sm:$0xff] }
 0x103   : > { %v812_v20 = vsel %vm703_vm2, %v748_v31, %v780_v63  ;;  %v813_v47 = vsel %vm703_vm2, %v749_v33, %v781_v10  ;;  %v818_v13 = vsel %vm703_vm2, %v754_v40, %v786_v42  ;;  %v819_v17 = vsel %vm703_vm2, %v755_v50, %v787_v43  ;;  %v277_v33 = vld [vmem:[%s1610_s7 + $0x28] sm:$0xff]  ;;  %284 = vst [vmem:[%s1932_s22 + $0x20] sm:$0xff] %v276_v53  ;;  %v278_v43 = vld [vmem:[%s1610_s7 + $0x30] sm:$0xff] }
 0x104   : > { %v822_v51 = vsel %vm703_vm2, %v758_v52, %v790_v3  ;;  %v823_v22 = vsel %vm703_vm2, %v759_v30, %v791_v49  ;;  %v864_v23 = vadd.f32 %v1831_v27, %v808_v2  ;;  %v865_v37 = vadd.f32 %v1831_v27, %v809_v7  ;;  %285 = vst [vmem:[%s1932_s22 + $0x28] sm:$0xff] %v277_v33 }
 0x105   : > { %v868_v34 = vadd.f32 %v1856_v15, %v812_v20  ;;  %v869_v38 = vadd.f32 %v1856_v15, %v813_v47  ;;  %v874_v6 = vadd.f32 %v854_v45, %v818_v13  ;;  %v875_v18 = vadd.f32 %v854_v45, %v819_v17  ;;  %v279_v20 = vld [vmem:[%s1610_s7 + $0x38] sm:$0xff]  ;;  %286 = vst [vmem:[%s1932_s22 + $0x30] sm:$0xff] %v278_v43 }
 0x106   : > { %v880_v27 = vmax.f32 %v864_v23, 0.0  ;;  %v881_v35 = vmax.f32 %v865_v37, 0.0  ;;  %v878_v36 = vadd.f32 %v862_v28, %v822_v51  ;;  %v879_v46 = vadd.f32 %v862_v28, %v823_v22  ;;  %287 = vst [vmem:[%s1932_s22 + $0x38] sm:$0xff] %v279_v20 }
 0x107   : > { %v884_v15 = vmax.f32 %v868_v34, 0.0  ;;  %v885_v31 = vmax.f32 %v869_v38, 0.0  ;;  %v890_v32 = vmax.f32 %v874_v6, 0.0  ;;  %v891_v56 = vmax.f32 %v875_v18, 0.0  ;;  %v846_v6 = vpop.permute.xlu0 %845 }
 0x108   : > { %v912_v40 = vrot.slane %v881_v35, 6  ;;  %v894_v45 = vmax.f32 %v878_v36, 0.0  ;;  %v895_v50 = vmax.f32 %v879_v46, 0.0  ;;  %v731_v52 = vrot.slane %v730_v55, 1 }
 0x109   : > { %v914_v30 = vrot.slane %v885_v31, 6  ;;  %v917_v0 = vrot.slane %v891_v56, 6  ;;  %v737_v5 = vrot.slane %v736_v25, 4  ;;  %v741_v44 = vrot.slane %v1912_v41, 6 }
 0x10a   : > { %v921_v19 = vsel %vm920_vm8, %v880_v27, %v912_v40  ;;  %v919_v8 = vrot.slane %v895_v50, 6  ;;  %v778_v11 = vperm.slane %v731_v52, 0  ;;  %v779_v60 = vperm.slane %v731_v52, 1  ;;  %v858_v22 = vpop.permute.xlu1 %857 }
 0x10b   : > { %v923_v57 = vsel %vm920_vm8, %v884_v15, %v914_v30  ;;  %v926_v21 = vsel %vm920_vm8, %v890_v32, %v917_v0  ;;  %929 = vst [vmem:[#allocation1] ss:$4 sm:$0xff] %v921_v19  ;;  %v784_v55 = vperm.slane %v737_v5, 0  ;;  %v785_v63 = vperm.slane %v737_v5, 1 }
 0x10c   : > { %933 = vst [vmem:[#allocation1 + $0x2] ss:$4 sm:$0xff] %v923_v57  ;;  %v928_v25 = vsel %vm920_vm8, %v894_v45, %v919_v8  ;;  %v810_v41 = vsel %vm703_vm2, %v1871_v9, %v778_v11  ;;  %v811_v10 = vsel %vm703_vm2, %v1877_v26, %v779_v60  ;;  %v788_v42 = vperm.slane %v741_v44, 0 }
 0x10d   : > { %939 = vst [vmem:[#allocation1 + $0x21] ss:$4 sm:$0xff] %v926_v21  ;;  %v866_v3 = vadd.f32 %v1879_v58, %v810_v41  ;;  %v867_v49 = vadd.f32 %v1879_v58, %v811_v10  ;;  %v816_v2 = vsel %vm703_vm2, %v1881_v39, %v784_v55  ;;  %v817_v7 = vsel %vm703_vm2, %v1883_v14, %v785_v63 }
 0x10e   : > { %943 = vst [vmem:[#allocation1 + $0x23] ss:$4 sm:$0xff] %v928_v25  ;;  %v872_v9 = vadd.f32 %v850_v4, %v816_v2  ;;  %v873_v47 = vadd.f32 %v850_v4, %v817_v7  ;;  %v789_v26 = vperm.slane %v741_v44, 1  ;;  %v820_v13 = vsel %vm703_vm2, %v1885_v62, %v788_v42 }
 0x10f   : > { %v883_v17 = vmax.f32 %v867_v49, 0.0  ;;  %v734_v58 = vsel %vm711_vm7, %v1873_v54, %v1875_v16  ;;  %v750_v39 = vperm.slane %v713_v59, 0  ;;  %v751_v37 = vperm.slane %v713_v59, 1 }
 0x110   : > { %v889_v51 = vmax.f32 %v873_v47, 0.0  ;;  %v821_v14 = vsel %vm703_vm2, %v1887_v24, %v789_v26  ;;  %v735_v23 = vrot.slane %v734_v58, 3  ;;  %v882_v62 = vmax.f32 %v866_v3, 0.0 }
 0x111   : > { %v913_v61 = vrot.slane %v883_v17, 6  ;;  %v876_v12 = vadd.f32 %v858_v22, %v820_v13  ;;  %v877_v1 = vadd.f32 %v858_v22, %v821_v14  ;;  %v888_v34 = vmax.f32 %v872_v9, 0.0 }
 0x112   : > { %v916_v54 = vrot.slane %v889_v51, 6  ;;  %v782_v16 = vperm.slane %v735_v23, 0  ;;  %v783_v38 = vperm.slane %v735_v23, 1 }
 0x113   : > { %v922_v18 = vsel %vm920_vm8, %v882_v62, %v913_v61  ;;  %v893_v28 = vmax.f32 %v877_v1, 0.0  ;;  %v892_v29 = vmax.f32 %v876_v12, 0.0 }
 0x114   : > { %931 = vst [vmem:[#allocation1 + $0x1] ss:$4 sm:$0xff] %v922_v18  ;;  %v925_v24 = vsel %vm920_vm8, %v888_v34, %v916_v54  ;;  %v814_v48 = vsel %vm703_vm2, %v750_v39, %v782_v16  ;;  %v815_v59 = vsel %vm703_vm2, %v751_v37, %v783_v38 }
 0x115   : > { %937 = vst [vmem:[#allocation1 + $0x20] ss:$4 sm:$0xff] %v925_v24  ;;  %v918_v27 = vrot.slane %v893_v28, 6  ;;  %v870_v35 = vadd.f32 %v846_v6, %v814_v48  ;;  %v871_v36 = vadd.f32 %v846_v6, %v815_v59 }
 0x117   : > { %v927_v46 = vsel %vm920_vm8, %v892_v29, %v918_v27  ;;  %v887_v4 = vmax.f32 %v871_v36, 0.0  ;;  %v886_v53 = vmax.f32 %v870_v35, 0.0 }
 0x118   : > { %941 = vst [vmem:[#allocation1 + $0x22] ss:$4 sm:$0xff] %v927_v46 }
 0x119   : > { %v915_v15 = vrot.slane %v887_v4, 6 }
 0x11b   : > { %v924_v31 = vsel %vm920_vm8, %v886_v53, %v915_v15 }
 0x11c   : > { %935 = vst [vmem:[#allocation1 + $0x3] ss:$4 sm:$0xff] %v924_v31 }
 0x11f   : > { %v946_v32 = vld.sshfl [vmem:[#allocation1 + $0x20] sm:$0xff pattern:$0x73625140]  ;;  %v947_v56 = vld.sshfl [vmem:[#allocation1 + $0x28] sm:$0xff pattern:$0x73625140] }
 0x120   : > { %954 = vst [vmem:[%s1932_s22 + $0x50] sm:$0xff] %v946_v32 }
 0x121   : > { %955 = vst [vmem:[%s1932_s22 + $0x58] sm:$0xff] %v947_v56 }
 0x123   : > { %v944_v33 = vld.sshfl [vmem:[#allocation1] sm:$0xff pattern:$0x73625140]  ;;  %v945_v40 = vld.sshfl [vmem:[#allocation1 + $0x8] sm:$0xff pattern:$0x73625140] }
 0x124   : > { %952 = vst [vmem:[%s1932_s22 + $0x40] sm:$0xff] %v944_v33 }
 0x125   : > { %953 = vst [vmem:[%s1932_s22 + $0x48] sm:$0xff] %v945_v40 }
 0x126   : > { %1388 = shalt.err (!%p1385_p1)
}
 0x127   : > { %s1477_s6 = smov 256   ;;  %s1478_s9 = smov 16  }
 0x128   : > { %1153 = dma.vmem_to_hbm [thread:$0]  (%p1551_p8), %s972_s27, 1536, %s974_s29, %s957_s15, %s1477_s6, %s1477_s6, %s1478_s9  }
 0x129 PF: > { %s988_s7 = sand.u32 1, %s1431_s12   ;;  %p1167_p2 = pnand %p1100_p13, %p1555_p9 }
 0x12a   : > { %s989_s0 = scalar_lea.sflag [#allocation4], %s988_s7 }
 0x12b   : > { %p1168_p4 = pneg %p1167_p2 }
 0x12d   : > { %1426 = dma.done.wait (%p1168_p4), %s989_s0, 1536  }
 0x12e   : > { %1428 = vsyncadd (%p1168_p4), %s989_s0, 4294965760  ;;  %s22_s17 = sadd.s32 1, %s1451_s17   ;;  %s2047_s15 = sld [smem:[#allocation13_spill]] }
 0x12f   : > { %p19_p6 = scmp.ge.s32.totalorder %s22_s17, 4   ;;  %s2048_s16 = sld [smem:[#allocation14_spill]] }
 0x130   : > { %s2049_s12 = smov %s1435_s13  ;;  %s2050_s13 = smov %s1439_s14 }
 0x131   : > { %s2051_s14 = smov %s1593_s26  ;;  %21 = sbr.rel (!%p19_p6) target bundleno = 11 (0xb), region = 128 }
 0x136   :  { %995 = vsyncpa [#allocation3], 1 }
 0x137   :  { %997 = vsyncpa [#allocation3 + $0x1], 1 }
 0x138   :  { %998 = vsyncpa [#allocation6], 1 }
 0x139   :  { %1000 = vsyncpa [#allocation6 + $0x1], 1 }
 0x13a   :  { %1001 = vsyncpa [#allocation4], 1 }
 0x13b   :  { %1003 = vsyncpa [#allocation4 + $0x1], 1 }

</bundles_post_ra>
